<compile_context>
chip_gen: v6e
topology: v6e:2x2x1
jax: 0.10.0
libtpu: 0.0.40
codegen_flags: <defaults>
</compile_context>

<pallas_src>
import types

import jax
import jax.numpy as jnp
from jax.experimental import pallas as pl
from jax.experimental.pallas import tpu as pltpu

_POOLER_TYPES = ("cls", "cls_before_pooler", "avg", "avg_top2", "avg_first_last")


def _round_up(x, m):
    return ((x + m - 1) // m) * m


def _vmem_limit_bytes():
    try:
        cap = int(pltpu.get_tpu_info().vmem_capacity_bytes)
    except Exception:
        cap = 64 * 1024 * 1024                    # conservative: v7x per-TC VMEM
    return min((cap * 3) // 4, 96 * 1024 * 1024)  # 48 MiB on v7x, 96 MiB on v5e/v6e


def _choose_tiles(b, s, h, n_hidden, in_itemsize, out_itemsize, budget_bytes):
    """Pick (batch_tile, seq_tile) so one double-buffered grid step fits VMEM."""
    h_pad = max(_round_up(h, 128), 128)
    seq_align = 32 if in_itemsize == 1 else (16 if in_itemsize == 2 else 8)

    def step_bytes(tb, ts):
        tb_pad = max(_round_up(tb, 8), 8)
        ts_pad = max(_round_up(ts, seq_align), seq_align)
        hidden = n_hidden * 2 * tb * ts_pad * h_pad * in_itemsize  # 2x double-buffer
        mask = 2 * tb * ts_pad * 128 * 4      # (tb, ts, 1) block lane-pads to 128
        den = 2 * tb_pad * 128 * 4
        out = 2 * tb_pad * h_pad * out_itemsize
        acc = tb_pad * h_pad * 4
        temps = (n_hidden + 1) * tb * ts_pad * h_pad * 4           # f32 casts/product
        return hidden + mask + den + out + acc + temps

    # Batch tile: multiple of 8 (or the full batch when b <= 8); keep >= 2 batch
    # blocks so the "parallel" axis can use both v7x TensorCores and the
    # pipeline has more than one outer step.
    if b <= 8:
        tb = b
    else:
        tb = min(64, _round_up(pl.cdiv(b, 8), 8))
        tb = max(8, min(tb, (b // 8) * 8))

    # Seq tile: ~512 rows amortizes the ~0.35us per-step overhead; shrink it
    # (then the batch tile) until the step fits the budget.
    ts = min(s, 512)
    while ts > seq_align and step_bytes(tb, ts) > budget_bytes:
        ts = max(seq_align, ((ts // 2) // seq_align) * seq_align)
    while tb > 8 and step_bytes(tb, ts) > budget_bytes:
        tb = max(8, ((tb // 2) // 8) * 8)
    return tb, min(ts, s)


def _make_pool_kernel(n_hidden, s_total, ts, need_seq_mask):
    """Masked-mean kernel over a 2-D (batch, seq) grid with f32 accumulation."""

    def kernel(*refs):
        h_refs = refs[:n_hidden]
        w_ref, den_ref, o_ref, acc_ref = refs[n_hidden:]
        j = pl.program_id(1)

        @pl.when(j == 0)
        def _init():
            acc_ref[...] = jnp.zeros_like(acc_ref)

        if n_hidden == 1:
            hblk = h_refs[0][...].astype(jnp.float32)             # (tb, ts, H)
        else:  # fuse the (h1 + h2) / 2 layer average in-kernel
            hblk = (h_refs[0][...].astype(jnp.float32)
                    + h_refs[1][...].astype(jnp.float32)) * 0.5
        w = w_ref[...].astype(jnp.float32)                        # (tb, ts, 1)
        prod = hblk * w                                           # lane-broadcast over H
        if need_seq_mask:                                         # ragged last seq block
            tb_ = prod.shape[0]
            s_idx = j * ts + jax.lax.broadcasted_iota(jnp.int32, (tb_, ts, 1), 1)
            prod = jnp.where(s_idx < s_total, prod, 0.0)          # zero padded rows
        acc_ref[...] += jnp.sum(prod, axis=1)                     # (tb, H) f32

        @pl.when(j == pl.num_programs(1) - 1)
        def _finalize():
            o_ref[...] = (acc_ref[...] / den_ref[...]).astype(o_ref.dtype)

    return kernel


def _masked_mean_pool(hiddens, mask_w, den):
    """out[b] = sum_s mask[b,s] * mean(hiddens)[b,s] / den[b]."""
    b, s, h = hiddens[0].shape
    n = len(hiddens)
    out_dtype = hiddens[0].dtype

    vmem_limit = _vmem_limit_bytes()
    budget = (vmem_limit * 4) // 5                    # headroom for Mosaic scratch
    tb, ts = _choose_tiles(b, s, h, n, jnp.dtype(hiddens[0].dtype).itemsize,
                           jnp.dtype(out_dtype).itemsize, budget)
    grid = (pl.cdiv(b, tb), pl.cdiv(s, ts))
    need_seq_mask = (s % ts) != 0

    h_spec = pl.BlockSpec((tb, ts, h), lambda i, j: (i, j, 0))
    w_spec = pl.BlockSpec((tb, ts, 1), lambda i, j: (i, j, 0))
    d_spec = pl.BlockSpec((tb, 1), lambda i, j: (i, 0))
    o_spec = pl.BlockSpec((tb, h), lambda i, j: (i, 0))

    return pl.pallas_call(
        _make_pool_kernel(n, s, ts, need_seq_mask),
        out_shape=jax.ShapeDtypeStruct((b, h), out_dtype),
        grid=grid,
        in_specs=[h_spec] * n + [w_spec, d_spec],
        out_specs=o_spec,
        scratch_shapes=[pltpu.VMEM((tb, h), jnp.float32)],
        compiler_params=pltpu.CompilerParams(
            dimension_semantics=("parallel", "arbitrary"),
            vmem_limit_bytes=vmem_limit,
        ),
    )(*hiddens, mask_w, den)


def _cls_kernel(h_ref, o_ref):
    # (tb, 1, H) -> (tb, H): reducing over the unit seq axis is an exact squeeze.
    o_ref[...] = jnp.sum(h_ref[...], axis=1).astype(o_ref.dtype)


def _cls_pool(cls_hidden):
    """Copy the (B, 1, H) CLS slice to a lane-dense (B, H) output."""
    b, _, h = cls_hidden.shape
    if b <= 8:
        tb = b
    else:
        tb = max(8, min(256, _round_up(pl.cdiv(b, 8), 8)))
        tb = min(tb, (b // 8) * 8)
    grid = (pl.cdiv(b, tb),)
    return pl.pallas_call(
        _cls_kernel,
        out_shape=jax.ShapeDtypeStruct((b, h), cls_hidden.dtype),
        grid=grid,
        in_specs=[pl.BlockSpec((tb, 1, h), lambda i: (i, 0, 0))],
        out_specs=pl.BlockSpec((tb, h), lambda i: (i, 0)),
        compiler_params=pltpu.CompilerParams(dimension_semantics=("parallel",)),
    )(cls_hidden)


class Pooler:
    """Pallas equivalent of the SimCSE Pooler module."""

    def __init__(self, pooler_type):
        assert pooler_type in _POOLER_TYPES
        self.pooler_type = pooler_type

    def __call__(self, outputs, attention_mask):
        last_hidden = outputs.last_hidden_state
        hidden_states = outputs.hidden_states

        if self.pooler_type in ("cls", "cls_before_pooler"):
            # XLA slice reads only the B*H CLS elements from HBM; the Pallas
            # kernel then writes the lane-dense (B, H) output.
            # TODO(synk): a manual-DMA gather could skip this intermediate copy.
            return _cls_pool(last_hidden[:, 0:1, :])

        mask_w = attention_mask.astype(jnp.float32)[:, :, None]          # (B, S, 1)
        den = attention_mask.astype(jnp.float32).sum(-1, keepdims=True)  # (B, 1)
        if self.pooler_type == "avg":
            return _masked_mean_pool((last_hidden,), mask_w, den)
        elif self.pooler_type == "avg_first_last":
            return _masked_mean_pool((hidden_states[0], hidden_states[-1]), mask_w, den)
        elif self.pooler_type == "avg_top2":
            return _masked_mean_pool((hidden_states[-1], hidden_states[-2]), mask_w, den)
        else:
            raise NotImplementedError


def _reference(pooler_type, last_hidden, hidden_states, attention_mask):
    m = attention_mask.astype(jnp.float32)
    if pooler_type in ("cls", "cls_before_pooler"):
        return last_hidden[:, 0]
    if pooler_type == "avg":
        h = last_hidden
    elif pooler_type == "avg_first_last":
        h = (hidden_states[0] + hidden_states[-1]) / 2.0
    elif pooler_type == "avg_top2":
        h = (hidden_states[-1] + hidden_states[-2]) / 2.0
    else:
        raise NotImplementedError
    return (h * m[:, :, None]).sum(1) / m.sum(-1, keepdims=True)


def _run_case(b, s, h, n_layers, key):
    keys = jax.random.split(key, n_layers + 1)
    hidden_states = tuple(
        jax.random.normal(k, (b, s, h), dtype=jnp.float32) for k in keys[:n_layers])
    outputs = types.SimpleNamespace(
        last_hidden_state=hidden_states[-1], hidden_states=hidden_states)
    lengths = jax.random.randint(keys[-1], (b,), 1, s + 1)      # no all-zero rows
    attention_mask = (jnp.arange(s)[None, :] < lengths[:, None]).astype(jnp.int32)

    for pt in _POOLER_TYPES:
        out = jax.block_until_ready(Pooler(pt)(outputs, attention_mask))
        ref = _reference(pt, outputs.last_hidden_state, hidden_states, attention_mask)
        assert out.shape == (b, h), (pt, out.shape)
        assert jnp.allclose(out, ref, rtol=1e-5, atol=1e-5), (
            pt, float(jnp.max(jnp.abs(out - ref))))


if __name__ == "__main__":
    root = jax.random.PRNGKey(0)
    k_small, k_big = jax.random.split(root)
    # Small shapes consistent with the module.
    _run_case(b=2, s=8, h=32, n_layers=4, key=k_small)
    # Larger shapes exercising seq tiling (ragged last seq block) + partial batch tile.
    _run_case(b=10, s=640, h=256, n_layers=3, key=k_big)
    print("KERNEL_OK")
</pallas_src>

<mosaic_0001>
module attributes {stable_mosaic.version = 11 : i64} {
  func.func @_cls_kernel(%arg0: i32, %arg1: memref<2x1x32xf32, #tpu.memory_space<vmem>>, %arg2: memref<2x32xf32, #tpu.memory_space<vmem>>) attributes {dimension_semantics = [#tpu.dimension_semantics<parallel>], iteration_bounds = array<i64: 1>, scalar_prefetch = 0 : i64, scratch_operands = 0 : i64, tpu.core_type = #tpu.core_type<tc>, window_params = [{transform_indices = @transform_0, window_bounds = array<i64: 2, 1, 32>}, {transform_indices = @transform_1, window_bounds = array<i64: 2, 32>}]} {
    %c0 = arith.constant 0 : index
    %c0_0 = arith.constant 0 : index
    %c0_1 = arith.constant 0 : index
    %0 = vector.load %arg1[%c0, %c0_0, %c0_1] : memref<2x1x32xf32, #tpu.memory_space<vmem>>, vector<2x1x32xf32>
    %cst = arith.constant dense<0.000000e+00> : vector<2x32xf32>
    %1 = vector.multi_reduction <add>, %0, %cst [1] : vector<2x1x32xf32> to vector<2x32xf32>
    %c0_2 = arith.constant 0 : index
    %c0_3 = arith.constant 0 : index
    %2 = vector.load %arg2[%c0_2, %c0_3] : memref<2x32xf32, #tpu.memory_space<vmem>>, vector<2x32xf32>
    tpu.vector_store %arg2[%c0_2, %c0_3], %1 {strides = array<i32>} : memref<2x32xf32, #tpu.memory_space<vmem>>, vector<2x32xf32>,
    return
  }
  func.func @transform_0(%arg0: i32) -> (i32, i32, i32) {
    %c0_i32 = arith.constant 0 : i32
    %c0_i32_0 = arith.constant 0 : i32
    %c0_i32_1 = arith.constant 0 : i32
    return %arg0, %c0_i32, %c0_i32_0 : i32, i32, i32
  }
  func.func @transform_1(%arg0: i32) -> (i32, i32) {
    %c0_i32 = arith.constant 0 : i32
    %c0_i32_0 = arith.constant 0 : i32
    return %arg0, %c0_i32 : i32, i32
  }
}

</mosaic_0001>

<bundles_post_ra>
// kernel: tpu_custom_call.1
= control target key start
LH: loop header
LB: loop body
LE: loop exit
PB: predicated region body
PF: predicated region fallthrough
CT: control target
= control target key end

     0   :  { %6 = vsyncpa [#allocation3], 0  ;;  %s132_s0 = inlined_call_operand.hbm [shape: f32[2,1,32], index: 0, kind: input, shape index: {}]   ;;  %s133_s1 = inlined_call_operand.hbm [shape: f32[2,32], index: 1, kind: output, shape index: {}]  }
   0x1   :  { %7 = vsyncpa [#allocation4], 0  ;;  %s111_s6 = smov [#allocation2]  }
   0x2   :  { %s13_s7 = sshll.u32 %s111_s6, 4  ;;  %s14_s7 = int_to_ptr.vmem [resolvable:$true] %s13_s7 }
   0x3   :  { %s75_s8 = scalar_lea.vmem %s14_s7, 32  ;;  %p80_p1 = scmp.lt.s32.totalorder %s14_s7, %s14_s7 }
   0x4   :  { %p76_p0 = scmp.ne.s32.totalorder %s14_s7, %s75_s8  ;;  %p81_p2 = scmp.lt.s32.totalorder %s75_s8, %s75_s8 }
   0x6   :  { %p82_p3 = por %p81_p2, %p80_p1 }
   0x8   :  { %p83_p4 = pnand %p82_p3, %p76_p0 }
   0xa   :  { %86 = shalt.err (!%p83_p4)
}
   0xb   :  { %s112_s9 = smov 16   ;;  %s113_s10 = smov 1  }
   0xc   :  { %19 = dma.hbm_to_vmem [thread:$0]  %s132_s0, 32, %s14_s7, [#allocation3], %s112_s9, %s112_s9, %s113_s10  }
   0xd   :  { %107 = dma.done.wait [#allocation3], 32  }
   0xe   :  { %108 = vsyncadd [#allocation3], 4294967264  ;;  %v33_v0 = vlaneseq  ;;  %v114_v1 = vmov 1966171168   ;;  %v23_v6 = vld [vmem:[#allocation2] sm:$0x1] }
   0xf   :  { %v31_v2 = vunpack.c.l.s4 %v114_v1  ;;  %v24_v7 = vld [vmem:[#allocation2 + $0x1] sm:$0x1]  ;;  %s115_s13 = smov [#allocation5]   ;;  %vm45_vm0 = vcmask 254976  }
  0x10   :  { %v34_v3 = vshrl.u32 %v33_v0, 7  ;;  %v29_v8 = vcombine.low %v23_v6, %v24_v7  ;;  %s53_s14 = sshll.u32 %s115_s13, 4  ;;  %s54_s14 = int_to_ptr.vmem [resolvable:$true] %s53_s14 }
  0x11   :  { %v32_v4 = vunpack.c.0.s8 %v31_v2  ;;  %s87_s15 = scalar_lea.vmem %s54_s14, 32  ;;  %p92_p6 = scmp.lt.s32.totalorder %s54_s14, %s54_s14 }
  0x12   :  { %p88_p5 = scmp.ne.s32.totalorder %s54_s14, %s87_s15  ;;  %p93_p7 = scmp.lt.s32.totalorder %s87_s15, %s87_s15 }
  0x13   :  { %v35_v5 = vsub.s32 %v32_v4, %v34_v3 }
  0x14   :  { %p94_p8 = por %p93_p7, %p92_p6 }
  0x15   :  { %v36_v9 = vrot.slane %v29_v8, %v35_v5 }
  0x16   :  { %p95_p9 = pnand %p94_p8, %p88_p5 }
  0x17   :  { %v43_v10 = vrot.slane %v36_v9, %v35_v5 }
  0x19   :  { %46 = vst.msk [vmem:[#allocation5] sm:$0x3] %vm45_vm0, %v43_v10 }
  0x1a   :  { %98 = shalt.err (!%p95_p9)
}
  0x1b   :  { %56 = dma.vmem_to_hbm [thread:$0]  %s54_s14, 32, %s133_s1, [#allocation4]  }
  0x1c   :  { %109 = dma.done.wait [#allocation4], 32  }
  0x1d   :  { %110 = vsyncadd [#allocation4], 4294967264 }
  0x1e   :  { %60 = vsyncpa [#allocation3], 1 }
  0x1f   :  { %61 = vsyncpa [#allocation4], 1 }

</bundles_post_ra>
